<compile_context>
chip_gen: v7x
topology: tpu7x:2x2x1
jax: 0.10.0
libtpu: 0.0.40
codegen_flags: <defaults>
</compile_context>

<pallas_src>
import jax
import jax.numpy as jnp
from jax.experimental import pallas as pl
from jax.experimental.pallas import tpu as pltpu


def _patch_embed_kernel(x_ref, w_ref, b_ref, o_ref):
    # x_ref: (TM, D) compute_dtype   (streamed row tile)
    # w_ref: (D, channels)           (VMEM-resident, constant index_map)
    # b_ref: (1, channels) f32       (VMEM-resident)
    # o_ref: (TM, channels) out_dtype
    acc = jnp.dot(x_ref[...], w_ref[...], preferred_element_type=jnp.float32)
    o_ref[...] = (acc + b_ref[...]).astype(o_ref.dtype)


def _round_up(v, m):
    return ((v + m - 1) // m) * m


def pixel_unshuffle_nchw(x, p):
    """Matches torch.nn.PixelUnshuffle(p) on NCHW input (reference only)."""
    B, C, H, W = x.shape
    Hp, Wp = H // p, W // p
    x = x.reshape(B, C, Hp, p, Wp, p)          # (b, c, i, dy, j, dx)
    x = x.transpose(0, 1, 3, 5, 2, 4)          # (b, c, dy, dx, i, j)
    return x.reshape(B, C * p * p, Hp, Wp)


def simple_patches_forward(x, weight, bias, in_shape, patch_size,
                           *, tile_m=1024, compute_dtype=jnp.bfloat16,
                           out_dtype=None):
    """Forward pass of SimplePatches.

    x:      (B, C, H, W)  float32
    weight: (channels, C*p*p)   (PyTorch nn.Linear layout)
    bias:   (channels,)
    returns (B, num_patches, channels) in out_dtype (default: x.dtype)
    """
    C, H, W = in_shape
    p = patch_size
    Hp, Wp = H // p, W // p
    N = Hp * Wp
    D = C * p * p
    B = x.shape[0]
    channels = weight.shape[0]
    out_dtype = x.dtype if out_dtype is None else out_dtype

    # --- glue: single fused pixel-unshuffle + flatten to (B*N, D) patch rows,
    # with the bf16 cast applied FIRST so the reorder writes compute_dtype.
    # patches[b, i*Wp+j, c*p*p + dy*p + dx] = x[b, c, i*p+dy, j*p+dx]
    xc = x.astype(compute_dtype)
    patches = (xc.reshape(B, C, Hp, p, Wp, p)
                 .transpose(0, 2, 4, 1, 3, 5)
                 .reshape(B * N, D))

    M = B * N
    in_bytes = jnp.dtype(compute_dtype).itemsize
    out_bytes = jnp.dtype(out_dtype).itemsize

    # Row tile: large enough for pipelining, small enough for v7x's 64 MiB VMEM.
    TM = tile_m if M >= tile_m else _round_up(M, 16)

    def _vmem_need(tm):
        # double-buffered x / out tiles + pipeline-allocated weight + bias.
        return (2 * tm * D * in_bytes
                + 2 * tm * channels * out_bytes
                + 2 * D * channels * in_bytes
                + 2 * 8 * _round_up(channels, 128) * 4)

    # Keep the footprint under a conservative budget (fits v7x's 64 MiB).
    # TODO(synk): for very large D*channels a K grid axis + f32 accumulator
    # (init/finalize via pl.when) would be needed; not required at these sizes.
    while _vmem_need(TM) > (40 << 20) and TM > 256:
        TM //= 2

    M_pad = _round_up(M, TM)
    if M_pad != M:
        # Only ragged M pays the pad/slice; typical ViT shapes divide evenly.
        patches = jnp.pad(patches, ((0, M_pad - M), (0, 0)))

    w_mat = weight.T.astype(compute_dtype)               # (D, channels)
    b2d = bias.reshape(1, channels).astype(jnp.float32)  # f32 bias add

    vmem_limit = int(min(max(_vmem_need(TM) + (4 << 20), 32 << 20), 64 << 20))

    cost = pl.CostEstimate(
        flops=2 * M_pad * D * channels,
        transcendentals=0,
        bytes_accessed=(M_pad * D * in_bytes            # streamed x rows
                        + D * channels * in_bytes       # weight (once)
                        + channels * 4                  # bias
                        + M_pad * channels * out_bytes  # output
                        ))

    grid = (M_pad // TM,)
    out2d = pl.pallas_call(
        _patch_embed_kernel,
        out_shape=jax.ShapeDtypeStruct((M_pad, channels), out_dtype),
        grid_spec=pltpu.PrefetchScalarGridSpec(
            num_scalar_prefetch=0,
            grid=grid,
            in_specs=[
                pl.BlockSpec((TM, D), lambda i: (i, 0)),         # streamed rows
                pl.BlockSpec((D, channels), lambda i: (0, 0)),   # resident W
                pl.BlockSpec((1, channels), lambda i: (0, 0)),   # resident bias
            ],
            out_specs=pl.BlockSpec((TM, channels), lambda i: (i, 0)),
        ),
        compiler_params=pltpu.CompilerParams(
            dimension_semantics=("parallel",),    # megacore sharding of M
            vmem_limit_bytes=vmem_limit),
        cost_estimate=cost,
    )(patches, w_mat, b2d)

    if M_pad != M:
        out2d = out2d[:M]
    return out2d.reshape(B, N, channels)


if __name__ == "__main__":
    # Small shapes consistent with the module:
    #   in_shape = (C, H, W) = (4, 16, 16), patch_size = 2, channels = 32
    in_shape = (4, 16, 16)
    patch_size = 2
    channels = 32
    B = 2
    C, H, W = in_shape
    D = C * patch_size ** 2                                   # 16
    num_patches = (H // patch_size) * (W // patch_size)       # 64

    key = jax.random.PRNGKey(0)
    kx, kw, kb = jax.random.split(key, 3)
    x = jax.random.normal(kx, (B,) + in_shape, dtype=jnp.float32)
    # Deterministic init mimicking nn.Linear's uniform(-1/sqrt(D), 1/sqrt(D))
    bound = 1.0 / (D ** 0.5)
    weight = jax.random.uniform(kw, (channels, D), jnp.float32, -bound, bound)
    bias = jax.random.uniform(kb, (channels,), jnp.float32, -bound, bound)

    # f32 reference using the torch-faithful PixelUnshuffle -> view -> transpose
    # -> Linear path.
    xu = pixel_unshuffle_nchw(x, patch_size).reshape(B, D, num_patches)
    patches_ref = jnp.transpose(xu, (0, 2, 1))                # (B, N, D)
    ref_f32 = jnp.einsum("bnd,cd->bnc", patches_ref, weight,
                         precision=jax.lax.Precision.HIGHEST,
                         preferred_element_type=jnp.float32) + bias

    # 1) f32 compute path (faithful to the PyTorch f32 nn.Linear numerics).
    out_f32 = jax.block_until_ready(
        simple_patches_forward(x, weight, bias, in_shape, patch_size,
                               compute_dtype=jnp.float32))
    assert out_f32.shape == (B, num_patches, channels)
    assert jnp.allclose(out_f32, ref_f32, atol=2e-3, rtol=2e-3)

    # 2) Default bf16-operand / f32-accumulation fast path; loose tolerance
    #    vs. the f32 reference documents the precision of the fast path.
    out_bf16 = jax.block_until_ready(
        simple_patches_forward(x, weight, bias, in_shape, patch_size))
    assert out_bf16.shape == (B, num_patches, channels)
    assert jnp.allclose(out_bf16, ref_f32, atol=3e-2, rtol=3e-2)

    print("KERNEL_OK")
</pallas_src>

<mosaic_0001>
module attributes {stable_mosaic.version = 11 : i64} {
  func.func @_patch_embed_kernel(%arg0: i32, %arg1: memref<128x16xf32, #tpu.memory_space<vmem>>, %arg2: memref<16x32xf32, #tpu.memory_space<vmem>>, %arg3: memref<1x32xf32, #tpu.memory_space<vmem>>, %arg4: memref<128x32xf32, #tpu.memory_space<vmem>>) attributes {dimension_semantics = [#tpu.dimension_semantics<parallel>], iteration_bounds = array<i64: 1>, scalar_prefetch = 0 : i64, scratch_operands = 0 : i64, tpu.core_type = #tpu.core_type<tc>, window_params = [{transform_indices = @transform_0, window_bounds = array<i64: 128, 16>}, {pipeline_mode = #tpu.pipeline_mode<synchronous>, transform_indices = @transform_1, window_bounds = array<i64: 16, 32>}, {pipeline_mode = #tpu.pipeline_mode<synchronous>, transform_indices = @transform_2, window_bounds = array<i64: 1, 32>}, {transform_indices = @transform_3, window_bounds = array<i64: 128, 32>}]} {
    %c0 = arith.constant 0 : index
    %c0_0 = arith.constant 0 : index
    %0 = vector.load %arg1[%c0, %c0_0] : memref<128x16xf32, #tpu.memory_space<vmem>>, vector<128x16xf32>
    %c0_1 = arith.constant 0 : index
    %c0_2 = arith.constant 0 : index
    %1 = vector.load %arg2[%c0_1, %c0_2] : memref<16x32xf32, #tpu.memory_space<vmem>>, vector<16x32xf32>
    %cst = arith.constant dense<0.000000e+00> : vector<128x32xf32>
    %2 = tpu.matmul %0, %1, %cst {dimension_numbers = #tpu.dot_dimension_numbers<[1], [0], [0], [1], [0, 0, 1, 1], [], []>} : vector<128x16xf32>, vector<16x32xf32>, vector<128x32xf32> -> vector<128x32xf32>
    %c0_3 = arith.constant 0 : index
    %c0_4 = arith.constant 0 : index
    %3 = vector.load %arg3[%c0_3, %c0_4] : memref<1x32xf32, #tpu.memory_space<vmem>>, vector<1x32xf32>
    %4 = vector.broadcast %3 : vector<1x32xf32> to vector<128x32xf32>
    %5 = arith.addf %2, %4 : vector<128x32xf32>
    %c0_5 = arith.constant 0 : index
    %c0_6 = arith.constant 0 : index
    %6 = vector.load %arg4[%c0_5, %c0_6] : memref<128x32xf32, #tpu.memory_space<vmem>>, vector<128x32xf32>
    tpu.vector_store %arg4[%c0_5, %c0_6], %5 {strides = array<i32>} : memref<128x32xf32, #tpu.memory_space<vmem>>, vector<128x32xf32>,
    return
  }
  func.func @transform_0(%arg0: i32) -> (i32, i32) {
    %c0_i32 = arith.constant 0 : i32
    %c0_i32_0 = arith.constant 0 : i32
    return %arg0, %c0_i32 : i32, i32
  }
  func.func @transform_1(%arg0: i32) -> (i32, i32) {
    %c0_i32 = arith.constant 0 : i32
    %c0_i32_0 = arith.constant 0 : i32
    %c0_i32_1 = arith.constant 0 : i32
    return %c0_i32, %c0_i32_0 : i32, i32
  }
  func.func @transform_2(%arg0: i32) -> (i32, i32) {
    %c0_i32 = arith.constant 0 : i32
    %c0_i32_0 = arith.constant 0 : i32
    %c0_i32_1 = arith.constant 0 : i32
    return %c0_i32, %c0_i32_0 : i32, i32
  }
  func.func @transform_3(%arg0: i32) -> (i32, i32) {
    %c0_i32 = arith.constant 0 : i32
    %c0_i32_0 = arith.constant 0 : i32
    return %arg0, %c0_i32 : i32, i32
  }
}

</mosaic_0001>

<bundles_post_ra>
// kernel: tpu_custom_call.1
= control target key start
LH: loop header
LB: loop body
LE: loop exit
PB: predicated region body
PF: predicated region fallthrough
CT: control target
= control target key end

     0   :  { %vm39_vm0 = vcmask 130048   ;;  %vm233_vm1 = vcmask 261120   ;;  %s480_s1 = inlined_call_operand.vmem [shape: f32[16,32], index: 1, kind: input, shape index: {}]   ;;  %s481_s0 = inlined_call_operand.vmem [shape: f32[128,16], index: 0, kind: input, shape index: {}]   ;;  %s482_s2 = inlined_call_operand.vmem [shape: f32[1,32], index: 2, kind: input, shape index: {}]   ;;  %s483_s3 = inlined_call_operand.vmem [shape: f32[128,32], index: 3, kind: output, shape index: {}]  }
   0x1   :  { %v30_v0 = vld [vmem:[%s480_s1] sm:$0xff]  ;;  %v31_v1 = vld [vmem:[%s480_s1 + $0x8] sm:$0xff]  ;;  %v16_v7 = vld [vmem:[%s481_s0 + $0x10] sm:$0xff] }
   0x2   :  { %v14_v2 = vld [vmem:[%s481_s0] sm:$0xff]  ;;  %v317_v3 = vpack.c.bf16 %v31_v1, %v30_v0  ;;  %v15_v5 = vld [vmem:[%s481_s0 + $0x8] sm:$0xff]  ;;  %v24_v8 = vld [vmem:[%s481_s0 + $0x50] sm:$0xff] }
   0x3   :  { %293 = vmatprep.mubr.msk.f32.mxu0 %vm39_vm0, %v14_v2  ;;  %v22_v4 = vld [vmem:[%s481_s0 + $0x40] sm:$0xff]  ;;  %v23_v6 = vld [vmem:[%s481_s0 + $0x48] sm:$0xff]  ;;  %v17_v9 = vld [vmem:[%s481_s0 + $0x18] sm:$0xff] }
   0x4   :  { %305 = vmatprep.mubr.msk.f32.mxu1 %vm39_vm0, %v22_v4  ;;  %318 = vmatprep.subr.bf16.mxu0 %v317_v3  ;;  %v25_v10 = vld [vmem:[%s481_s0 + $0x58] sm:$0xff]  ;;  %v18_v11 = vld [vmem:[%s481_s0 + $0x20] sm:$0xff]  ;;  %v19_v13 = vld [vmem:[%s481_s0 + $0x28] sm:$0xff] }
   0x5   :  { %321 = vmatprep.subr.bf16.mxu1 %v317_v3  ;;  %320 = vmatpush3.bf16.msra.mxu0 %v317_v3  ;;  %v26_v12 = vld [vmem:[%s481_s0 + $0x60] sm:$0xff]  ;;  %v27_v14 = vld [vmem:[%s481_s0 + $0x68] sm:$0xff]  ;;  %v20_v15 = vld [vmem:[%s481_s0 + $0x30] sm:$0xff] }
   0x6   :  { %322 = vmatpush3.bf16.msra.mxu1 %v317_v3  ;;  %v28_v16 = vld [vmem:[%s481_s0 + $0x70] sm:$0xff]  ;;  %v21_v17 = vld [vmem:[%s481_s0 + $0x38] sm:$0xff]  ;;  %v254_v19 = vld [vmem:[%s482_s2] ss:$0 sm:$0xff] }
   0x7   :  { %v29_v18 = vld [vmem:[%s481_s0 + $0x78] sm:$0xff] }
   0x8   :  { %294 = vmatmul.mubr.msk.f32.vlgmr.msra.gmra.mrb[0].mxu0 %vm39_vm0, %v15_v5 }
   0x9   :  { %306 = vmatmul.mubr.msk.f32.vlgmr.msra.gmra.mrb[0].mxu1 %vm39_vm0, %v23_v6  ;;  %296 = vmatprep.mubr.msk.f32.mxu0 %vm39_vm0, %v16_v7 }
   0xa   :  { %308 = vmatprep.mubr.msk.f32.mxu1 %vm39_vm0, %v24_v8 }
   0xc   :  { %297 = vmatmul.mubr.msk.f32.gmra.mrb[2].mxu0 %vm39_vm0, %v17_v9 }
   0xd   :  { %309 = vmatmul.mubr.msk.f32.gmra.mrb[2].mxu1 %vm39_vm0, %v25_v10  ;;  %299 = vmatprep.mubr.msk.f32.mxu0 %vm39_vm0, %v18_v11 }
   0xe   :  { %311 = vmatprep.mubr.msk.f32.mxu1 %vm39_vm0, %v26_v12 }
  0x10   :  { %300 = vmatmul.mubr.msk.f32.gmra.mrb[4].mxu0 %vm39_vm0, %v19_v13 }
  0x11   :  { %312 = vmatmul.mubr.msk.f32.gmra.mrb[4].mxu1 %vm39_vm0, %v27_v14  ;;  %302 = vmatprep.mubr.msk.f32.mxu0 %vm39_vm0, %v20_v15 }
  0x12   :  { %314 = vmatprep.mubr.msk.f32.mxu1 %vm39_vm0, %v28_v16 }
  0x14   :  { %303 = vmatmul.mubr.msk.f32.gmra.mrb[6].mxu0 %vm39_vm0, %v21_v17 }
  0x15   :  { %315 = vmatmul.mubr.msk.f32.gmra.mrb[6].mxu1 %vm39_vm0, %v29_v18 }
  0xdb   :  { %v295_v20 = vpop.f32.mrb[0].mxu0 }
  0xdc   :  { %v307_v21 = vpop.f32.mrb[0].mxu1  ;;  %v160_v22 = vadd.f32 %v295_v20, %v254_v19  ;;  %v154_v24 = vpop.f32.mrb[1].mxu0 }
  0xdd   :  { %v200_v23 = vadd.f32 %v307_v21, %v254_v19  ;;  %v194_v25 = vpop.f32.mrb[1].mxu1  ;;  %v155_v26 = vadd.f32 %v254_v19, %v154_v24 }
  0xde   :  { %v195_v27 = vadd.f32 %v254_v19, %v194_v25  ;;  %235 = vst.msk [vmem:[%s483_s3 + $0x8] sm:$0xff] %vm233_vm1, %v160_v22 }
  0xdf   :  { %243 = vst.msk [vmem:[%s483_s3 + $0x48] sm:$0xff] %vm233_vm1, %v200_v23  ;;  %234 = vst.msk [vmem:[%s483_s3] sm:$0xff] %vm233_vm1, %v155_v26  ;;  %v298_v28 = vpop.f32.mrb[2].mxu0 }
  0xe0   :  { %242 = vst.msk [vmem:[%s483_s3 + $0x40] sm:$0xff] %vm233_vm1, %v195_v27  ;;  %v310_v29 = vpop.f32.mrb[2].mxu1  ;;  %v170_v30 = vadd.f32 %v298_v28, %v254_v19  ;;  %v164_v32 = vpop.f32.mrb[3].mxu0 }
  0xe1   :  { %v210_v31 = vadd.f32 %v310_v29, %v254_v19  ;;  %v204_v33 = vpop.f32.mrb[3].mxu1  ;;  %v165_v34 = vadd.f32 %v254_v19, %v164_v32 }
  0xe2   :  { %v205_v35 = vadd.f32 %v254_v19, %v204_v33  ;;  %237 = vst.msk [vmem:[%s483_s3 + $0x18] sm:$0xff] %vm233_vm1, %v170_v30 }
  0xe3   :  { %245 = vst.msk [vmem:[%s483_s3 + $0x58] sm:$0xff] %vm233_vm1, %v210_v31  ;;  %236 = vst.msk [vmem:[%s483_s3 + $0x10] sm:$0xff] %vm233_vm1, %v165_v34  ;;  %v301_v36 = vpop.f32.mrb[4].mxu0 }
  0xe4   :  { %244 = vst.msk [vmem:[%s483_s3 + $0x50] sm:$0xff] %vm233_vm1, %v205_v35  ;;  %v313_v37 = vpop.f32.mrb[4].mxu1  ;;  %v180_v38 = vadd.f32 %v301_v36, %v254_v19  ;;  %v174_v40 = vpop.f32.mrb[5].mxu0 }
  0xe5   :  { %v220_v39 = vadd.f32 %v313_v37, %v254_v19  ;;  %v214_v41 = vpop.f32.mrb[5].mxu1  ;;  %v175_v42 = vadd.f32 %v254_v19, %v174_v40 }
  0xe6   :  { %v215_v43 = vadd.f32 %v254_v19, %v214_v41  ;;  %239 = vst.msk [vmem:[%s483_s3 + $0x28] sm:$0xff] %vm233_vm1, %v180_v38 }
  0xe7   :  { %247 = vst.msk [vmem:[%s483_s3 + $0x68] sm:$0xff] %vm233_vm1, %v220_v39  ;;  %238 = vst.msk [vmem:[%s483_s3 + $0x20] sm:$0xff] %vm233_vm1, %v175_v42  ;;  %v304_v44 = vpop.f32.mrb[6].mxu0 }
  0xe8   :  { %246 = vst.msk [vmem:[%s483_s3 + $0x60] sm:$0xff] %vm233_vm1, %v215_v43  ;;  %v316_v45 = vpop.f32.mrb[6].mxu1  ;;  %v190_v46 = vadd.f32 %v304_v44, %v254_v19  ;;  %v184_v48 = vpop.f32.mrb[7].mxu0 }
  0xe9   :  { %v230_v47 = vadd.f32 %v316_v45, %v254_v19  ;;  %v224_v49 = vpop.f32.mrb[7].mxu1  ;;  %v185_v50 = vadd.f32 %v254_v19, %v184_v48 }
  0xea   :  { %v225_v51 = vadd.f32 %v254_v19, %v224_v49  ;;  %241 = vst.msk [vmem:[%s483_s3 + $0x38] sm:$0xff] %vm233_vm1, %v190_v46 }
  0xeb   :  { %249 = vst.msk [vmem:[%s483_s3 + $0x78] sm:$0xff] %vm233_vm1, %v230_v47  ;;  %240 = vst.msk [vmem:[%s483_s3 + $0x30] sm:$0xff] %vm233_vm1, %v185_v50 }
  0xec   :  { %248 = vst.msk [vmem:[%s483_s3 + $0x70] sm:$0xff] %vm233_vm1, %v225_v51 }

</bundles_post_ra>
